<compile_context>
chip_gen: v7x
topology: tpu7x:2x2x1
jax: 0.10.0
libtpu: 0.0.40
codegen_flags: <defaults>
</compile_context>

<pallas_src>
import functools

import jax
import jax.numpy as jnp
from jax.experimental import pallas as pl
from jax.experimental.pallas import tpu as pltpu

_LANES = 128
_MAX_LANES = 4096  # cap on lane width of the flat slab


def _add_kernel(a_ref, b_ref, o_ref):
    o_ref[...] = a_ref[...] + b_ref[...]


def _slab_layout(n_pad):
    """Pick (rows, lanes) with lanes the widest multiple of 128 dividing n_pad."""
    k = n_pad // _LANES
    lanes = _LANES
    for cand in range(min(k, _MAX_LANES // _LANES), 0, -1):
        if k % cand == 0:
            lanes = _LANES * cand
            break
    return n_pad // lanes, lanes


@functools.partial(jax.jit, static_argnames=())
def pallas_add(x, y):
    """Elementwise x + y via a single whole-array VMEM Pallas kernel."""
    assert x.shape == y.shape
    assert x.dtype == y.dtype
    orig_shape = x.shape

    n = 1
    for d in orig_shape:
        n *= int(d)

    # Pad only to the next multiple of 128 (lane width), and only if needed.
    n_pad = ((n + _LANES - 1) // _LANES) * _LANES
    rows, lanes = _slab_layout(n_pad)

    a = x.reshape(-1)
    b = y.reshape(-1)
    if n_pad != n:
        a = jnp.pad(a, (0, n_pad - n))
        b = jnp.pad(b, (0, n_pad - n))
    a = a.reshape(rows, lanes)
    b = b.reshape(rows, lanes)

    itemsize = jnp.dtype(x.dtype).itemsize
    out = pl.pallas_call(
        _add_kernel,
        out_shape=jax.ShapeDtypeStruct((rows, lanes), x.dtype),
        in_specs=[
            pl.BlockSpec(memory_space=pltpu.MemorySpace.VMEM),
            pl.BlockSpec(memory_space=pltpu.MemorySpace.VMEM),
        ],
        out_specs=pl.BlockSpec(memory_space=pltpu.MemorySpace.VMEM),
        cost_estimate=pl.CostEstimate(
            flops=n,
            transcendentals=0,
            bytes_accessed=3 * n * itemsize,
        ),
    )(a, b)

    out = out.reshape(-1)
    if n_pad != n:
        out = out[:n]
    return out.reshape(orig_shape)


if __name__ == "__main__":
    key = jax.random.PRNGKey(0)
    k1, k2 = jax.random.split(key)
    # Shapes consistent with the module's forward: (1, 96, 14, 14)
    x103 = jax.random.normal(k1, (1, 96, 14, 14), dtype=jnp.float32)
    x111 = jax.random.normal(k2, (1, 96, 14, 14), dtype=jnp.float32)

    x112 = pallas_add(x103, x111)
    jax.block_until_ready(x112)

    # Correctness check against plain JAX reference.
    ref = x103 + x111
    assert x112.shape == (1, 96, 14, 14)
    assert x112.dtype == ref.dtype
    assert jnp.allclose(x112, ref)

    print("KERNEL_OK")
</pallas_src>

<mosaic_0001>
module attributes {stable_mosaic.version = 11 : i64} {
  func.func @_add_kernel(%arg0: memref<7x2688xf32, #tpu.memory_space<vmem>>, %arg1: memref<7x2688xf32, #tpu.memory_space<vmem>>, %arg2: memref<7x2688xf32, #tpu.memory_space<vmem>>) attributes {dimension_semantics = [], scalar_prefetch = 0 : i64, scratch_operands = 0 : i64, tpu.core_type = #tpu.core_type<tc>} {
    %c0 = arith.constant 0 : index
    %c0_0 = arith.constant 0 : index
    %0 = vector.load %arg0[%c0, %c0_0] : memref<7x2688xf32, #tpu.memory_space<vmem>>, vector<7x2688xf32>
    %c0_1 = arith.constant 0 : index
    %c0_2 = arith.constant 0 : index
    %1 = vector.load %arg1[%c0_1, %c0_2] : memref<7x2688xf32, #tpu.memory_space<vmem>>, vector<7x2688xf32>
    %2 = arith.addf %0, %1 : vector<7x2688xf32>
    %c0_3 = arith.constant 0 : index
    %c0_4 = arith.constant 0 : index
    %3 = vector.load %arg2[%c0_3, %c0_4] : memref<7x2688xf32, #tpu.memory_space<vmem>>, vector<7x2688xf32>
    tpu.vector_store %arg2[%c0_3, %c0_4], %2 {strides = array<i32>} : memref<7x2688xf32, #tpu.memory_space<vmem>>, vector<7x2688xf32>,
    return
  }
}

</mosaic_0001>

<bundles_post_ra>
// kernel: pallas_add.1
= control target key start
LH: loop header
LB: loop body
LE: loop exit
PB: predicated region body
PF: predicated region fallthrough
CT: control target
= control target key end

     0   :  { %s303_s0 = inlined_call_operand.vmem [shape: f32[7,2688], index: 0, kind: input, shape index: {}]   ;;  %s304_s1 = inlined_call_operand.vmem [shape: f32[7,2688], index: 1, kind: input, shape index: {}]   ;;  %s305_s2 = inlined_call_operand.vmem [shape: f32[7,2688], index: 2, kind: output, shape index: {}]  }
   0x1   :  { %v11_v0 = vld [vmem:[%s303_s0] sm:$0x7f]  ;;  %v12_v2 = vld [vmem:[%s303_s0 + $0x8] sm:$0x7f]  ;;  %v13_v5 = vld [vmem:[%s303_s0 + $0x10] sm:$0x7f] }
   0x2   :  { %v32_v1 = vld [vmem:[%s304_s1] sm:$0x7f]  ;;  %v33_v4 = vld [vmem:[%s304_s1 + $0x8] sm:$0x7f]  ;;  %v34_v6 = vld [vmem:[%s304_s1 + $0x10] sm:$0x7f] }
   0x3   :  { %v53_v3 = vadd.f32 %v32_v1, %v11_v0  ;;  %v54_v7 = vadd.f32 %v33_v4, %v12_v2  ;;  %v55_v8 = vadd.f32 %v34_v6, %v13_v5  ;;  %v14_v9 = vld [vmem:[%s303_s0 + $0x18] sm:$0x7f]  ;;  %v15_v11 = vld [vmem:[%s303_s0 + $0x20] sm:$0x7f]  ;;  %v16_v14 = vld [vmem:[%s303_s0 + $0x28] sm:$0x7f] }
   0x4   :  { %v35_v10 = vld [vmem:[%s304_s1 + $0x18] sm:$0x7f]  ;;  %v36_v13 = vld [vmem:[%s304_s1 + $0x20] sm:$0x7f]  ;;  %v37_v15 = vld [vmem:[%s304_s1 + $0x28] sm:$0x7f] }
   0x5   :  { %74 = vst [vmem:[%s305_s2] sm:$0x7f] %v53_v3  ;;  %v56_v12 = vadd.f32 %v35_v10, %v14_v9  ;;  %75 = vst [vmem:[%s305_s2 + $0x8] sm:$0x7f] %v54_v7  ;;  %v57_v16 = vadd.f32 %v36_v13, %v15_v11  ;;  %v58_v17 = vadd.f32 %v37_v15, %v16_v14  ;;  %v17_v18 = vld [vmem:[%s303_s0 + $0x30] sm:$0x7f] }
   0x6   :  { %76 = vst [vmem:[%s305_s2 + $0x10] sm:$0x7f] %v55_v8  ;;  %v38_v19 = vld [vmem:[%s304_s1 + $0x30] sm:$0x7f]  ;;  %v18_v20 = vld [vmem:[%s303_s0 + $0x38] sm:$0x7f] }
   0x7   :  { %77 = vst [vmem:[%s305_s2 + $0x18] sm:$0x7f] %v56_v12  ;;  %v59_v21 = vadd.f32 %v38_v19, %v17_v18  ;;  %v39_v22 = vld [vmem:[%s304_s1 + $0x38] sm:$0x7f]  ;;  %v19_v23 = vld [vmem:[%s303_s0 + $0x40] sm:$0x7f] }
   0x8   :  { %v40_v24 = vld [vmem:[%s304_s1 + $0x40] sm:$0x7f]  ;;  %78 = vst [vmem:[%s305_s2 + $0x20] sm:$0x7f] %v57_v16  ;;  %79 = vst [vmem:[%s305_s2 + $0x28] sm:$0x7f] %v58_v17  ;;  %v60_v25 = vadd.f32 %v39_v22, %v18_v20 }
   0x9   :  { %v61_v26 = vadd.f32 %v40_v24, %v19_v23  ;;  %v20_v27 = vld [vmem:[%s303_s0 + $0x48] sm:$0x7f]  ;;  %v21_v29 = vld [vmem:[%s303_s0 + $0x50] sm:$0x7f]  ;;  %80 = vst [vmem:[%s305_s2 + $0x30] sm:$0x7f] %v59_v21 }
   0xa   :  { %v41_v28 = vld [vmem:[%s304_s1 + $0x48] sm:$0x7f]  ;;  %v42_v31 = vld [vmem:[%s304_s1 + $0x50] sm:$0x7f]  ;;  %v22_v32 = vld [vmem:[%s303_s0 + $0x58] sm:$0x7f] }
   0xb   :  { %v62_v30 = vadd.f32 %v41_v28, %v20_v27  ;;  %v43_v33 = vld [vmem:[%s304_s1 + $0x58] sm:$0x7f]  ;;  %81 = vst [vmem:[%s305_s2 + $0x38] sm:$0x7f] %v60_v25  ;;  %82 = vst [vmem:[%s305_s2 + $0x40] sm:$0x7f] %v61_v26  ;;  %v63_v34 = vadd.f32 %v42_v31, %v21_v29 }
   0xc   :  { %v64_v35 = vadd.f32 %v43_v33, %v22_v32  ;;  %v23_v36 = vld [vmem:[%s303_s0 + $0x60] sm:$0x7f]  ;;  %v24_v38 = vld [vmem:[%s303_s0 + $0x68] sm:$0x7f]  ;;  %v25_v41 = vld [vmem:[%s303_s0 + $0x70] sm:$0x7f] }
   0xd   :  { %v44_v37 = vld [vmem:[%s304_s1 + $0x60] sm:$0x7f]  ;;  %83 = vst [vmem:[%s305_s2 + $0x48] sm:$0x7f] %v62_v30  ;;  %v45_v40 = vld [vmem:[%s304_s1 + $0x68] sm:$0x7f] }
   0xe   :  { %v65_v39 = vadd.f32 %v44_v37, %v23_v36  ;;  %v46_v42 = vld [vmem:[%s304_s1 + $0x70] sm:$0x7f]  ;;  %84 = vst [vmem:[%s305_s2 + $0x50] sm:$0x7f] %v63_v34  ;;  %85 = vst [vmem:[%s305_s2 + $0x58] sm:$0x7f] %v64_v35  ;;  %v66_v43 = vadd.f32 %v45_v40, %v24_v38 }
   0xf   :  { %v67_v44 = vadd.f32 %v46_v42, %v25_v41  ;;  %v26_v45 = vld [vmem:[%s303_s0 + $0x78] sm:$0x7f]  ;;  %v27_v47 = vld [vmem:[%s303_s0 + $0x80] sm:$0x7f]  ;;  %v28_v50 = vld [vmem:[%s303_s0 + $0x88] sm:$0x7f] }
  0x10   :  { %v47_v46 = vld [vmem:[%s304_s1 + $0x78] sm:$0x7f]  ;;  %86 = vst [vmem:[%s305_s2 + $0x60] sm:$0x7f] %v65_v39  ;;  %v48_v49 = vld [vmem:[%s304_s1 + $0x80] sm:$0x7f] }
  0x11   :  { %v68_v48 = vadd.f32 %v47_v46, %v26_v45  ;;  %v49_v51 = vld [vmem:[%s304_s1 + $0x88] sm:$0x7f]  ;;  %87 = vst [vmem:[%s305_s2 + $0x68] sm:$0x7f] %v66_v43  ;;  %88 = vst [vmem:[%s305_s2 + $0x70] sm:$0x7f] %v67_v44  ;;  %v69_v52 = vadd.f32 %v48_v49, %v27_v47 }
  0x12   :  { %v70_v53 = vadd.f32 %v49_v51, %v28_v50  ;;  %v29_v54 = vld [vmem:[%s303_s0 + $0x90] sm:$0x7f]  ;;  %v30_v56 = vld [vmem:[%s303_s0 + $0x98] sm:$0x7f]  ;;  %v31_v59 = vld [vmem:[%s303_s0 + $0xa0] sm:$0x7f] }
  0x13   :  { %v50_v55 = vld [vmem:[%s304_s1 + $0x90] sm:$0x7f]  ;;  %89 = vst [vmem:[%s305_s2 + $0x78] sm:$0x7f] %v68_v48  ;;  %v51_v58 = vld [vmem:[%s304_s1 + $0x98] sm:$0x7f] }
  0x14   :  { %v71_v57 = vadd.f32 %v50_v55, %v29_v54  ;;  %v52_v60 = vld [vmem:[%s304_s1 + $0xa0] sm:$0x7f]  ;;  %90 = vst [vmem:[%s305_s2 + $0x80] sm:$0x7f] %v69_v52  ;;  %91 = vst [vmem:[%s305_s2 + $0x88] sm:$0x7f] %v70_v53  ;;  %v72_v61 = vadd.f32 %v51_v58, %v30_v56 }
  0x15   :  { %v73_v62 = vadd.f32 %v52_v60, %v31_v59 }
  0x16   :  { %92 = vst [vmem:[%s305_s2 + $0x90] sm:$0x7f] %v71_v57  ;;  %93 = vst [vmem:[%s305_s2 + $0x98] sm:$0x7f] %v72_v61 }
  0x17   :  { %94 = vst [vmem:[%s305_s2 + $0xa0] sm:$0x7f] %v73_v62 }

</bundles_post_ra>
